<compile_context>
chip_gen: v7x
topology: tpu7x:2x2x1
jax: 0.10.0
libtpu: 0.0.40
codegen_flags: <defaults>
</compile_context>

<pallas_src>
import functools

import jax
import jax.numpy as jnp
from jax.experimental import pallas as pl
from jax.experimental.pallas import tpu as pltpu


def _conv3x3_relu_kernel(x_ref, w_ref, b_ref, o_ref, xflat_ref, *, H, W):
    """One image per grid step.

    x_ref:     (1, C, H*W)       unpadded image, rows flattened (NCHW order)
    w_ref:     (C, 9*C)          packed weights: w[o, (dh*3+dw)*C + i] = W[o,i,dh,dw]
    b_ref:     (C, 1)            bias column
    o_ref:     (1, C, H*W)       lane-dense output block
    xflat_ref: (C, (H+2)*(W+2))  VMEM scratch: zero-padded image, rows flattened
    """
    C = x_ref.shape[1]
    Wp = W + 2                      # padded row length
    R = H * Wp - 2                  # shifted-slice window length (covers all outputs)

    # --- fused zero padding: pre-zero the scratch, place the image rows ---------
    xflat_ref[...] = jnp.zeros_like(xflat_ref)
    x = x_ref[0]                                            # (C, H*W)
    for i in range(H):                                      # VMEM-only row placement
        off = (i + 1) * Wp + 1
        xflat_ref[:, pl.ds(off, W)] = x[:, i * W:(i + 1) * W]

    # --- im2col: the 9 taps are static lane-offset slices of the flat image -----
    xv = xflat_ref[...]                                     # (C, (H+2)*Wp)
    cols = jnp.concatenate(
        [xv[:, dh * Wp + dw: dh * Wp + dw + R]
         for dh in range(3) for dw in range(3)],
        axis=0)                                             # (9*C, R)

    # --- single MXU matmul, K = 9*C, f32 accumulation ----------------------------
    acc = jnp.dot(w_ref[...], cols, preferred_element_type=jnp.float32)   # (C, R)
    y = jnp.maximum(acc + b_ref[...], 0.0)                  # bias + ReLU

    # --- drop the padded columns; write into the lane-dense output block ---------
    for h in range(H):
        o_ref[0, :, pl.ds(h * W, W)] = y[:, h * Wp: h * Wp + W].astype(o_ref.dtype)


@jax.jit
def _conv3x3_relu_nchw(x_nchw, w_cat, b_col):
    """3x3 same-conv + ReLU on one NCHW feature map. No pad / transpose passes."""
    N, C, H, W = x_nchw.shape
    P = (H + 2) * (W + 2)
    x_flat = x_nchw.reshape(N, C, H * W)          # contiguous -> metadata-only

    out_flat = pl.pallas_call(
        functools.partial(_conv3x3_relu_kernel, H=H, W=W),
        out_shape=jax.ShapeDtypeStruct((N, C, H * W), x_nchw.dtype),
        grid_spec=pltpu.PrefetchScalarGridSpec(
            num_scalar_prefetch=0,
            grid=(N,),
            in_specs=[
                pl.BlockSpec((1, C, H * W), lambda n: (n, 0, 0)),
                pl.BlockSpec((C, 9 * C), lambda n: (0, 0)),   # resident weights
                pl.BlockSpec((C, 1), lambda n: (0, 0)),       # resident bias
            ],
            out_specs=pl.BlockSpec((1, C, H * W), lambda n: (n, 0, 0)),
            scratch_shapes=[pltpu.VMEM((C, P), jnp.float32)],
        ),
        compiler_params=pltpu.CompilerParams(
            dimension_semantics=("parallel",)),               # megacore on v7x
    )(x_flat, w_cat, b_col)

    return out_flat.reshape(N, C, H, W)           # free: metadata-only reshape


def _pack_weight(weight_oihw):
    # (O, I, 3, 3) -> (O, 9*I) with column layout (dh*3 + dw)*I + i
    O, I = weight_oihw.shape[:2]
    return jnp.transpose(weight_oihw, (0, 2, 3, 1)).reshape(O, 9 * I)


def rpn_head_feature_single_conv(x_list, weight_oihw, bias):
    """Forward pass of RPNHeadFeatureSingleConv: [relu(conv(z)) for z in x]."""
    assert isinstance(x_list, (list, tuple))
    w_cat = _pack_weight(weight_oihw.astype(jnp.float32))
    b_col = bias.reshape(-1, 1).astype(jnp.float32)
    return [_conv3x3_relu_nchw(z, w_cat, b_col) for z in x_list]


def _reference(x_list, weight_oihw, bias):
    outs = []
    for x in x_list:
        y = jax.lax.conv_general_dilated(
            x, weight_oihw, window_strides=(1, 1), padding=((1, 1), (1, 1)),
            dimension_numbers=("NCHW", "OIHW", "NCHW"))
        outs.append(jax.nn.relu(y + bias.reshape(1, -1, 1, 1)))
    return outs


if __name__ == "__main__":
    key = jax.random.PRNGKey(0)
    in_channels = 8
    N = 2

    k_w, k_b, k_x0, k_x1 = jax.random.split(key, 4)
    # Conv2d(in_channels, in_channels, 3, stride=1, padding=1), PyTorch OIHW layout.
    # Module init: weight ~ Normal(0, 0.01), bias = 0.
    weight_oihw = 0.01 * jax.random.normal(
        k_w, (in_channels, in_channels, 3, 3), dtype=jnp.float32)
    bias = jnp.zeros((in_channels,), dtype=jnp.float32)

    # Input: a list of NCHW feature maps (e.g. FPN levels).
    x_list = [
        jax.random.normal(k_x0, (N, in_channels, 16, 16), dtype=jnp.float32),
        jax.random.normal(k_x1, (N, in_channels, 8, 8), dtype=jnp.float32),
    ]

    outs = rpn_head_feature_single_conv(x_list, weight_oihw, bias)
    outs = [jax.block_until_ready(o) for o in outs]

    refs = _reference(x_list, weight_oihw, bias)
    for o, r in zip(outs, refs):
        assert o.shape == r.shape
        assert jnp.allclose(o, r, atol=1e-5, rtol=1e-5), \
            float(jnp.max(jnp.abs(o - r)))

    # Extra check with a non-zero bias to exercise the bias-broadcast path.
    bias_nz = 0.1 * jax.random.normal(k_b, (in_channels,), dtype=jnp.float32)
    outs_nz = [jax.block_until_ready(o)
               for o in rpn_head_feature_single_conv(x_list, weight_oihw, bias_nz)]
    refs_nz = _reference(x_list, weight_oihw, bias_nz)
    for o, r in zip(outs_nz, refs_nz):
        assert jnp.allclose(o, r, atol=1e-5, rtol=1e-5), \
            float(jnp.max(jnp.abs(o - r)))

    print("KERNEL_OK")
</pallas_src>

<mosaic_0001>
module attributes {stable_mosaic.version = 11 : i64} {
  func.func @_conv3x3_relu_kernel(%arg0: i32, %arg1: memref<1x8x256xf32, #tpu.memory_space<vmem>>, %arg2: memref<8x72xf32, #tpu.memory_space<vmem>>, %arg3: memref<8x1xf32, #tpu.memory_space<vmem>>, %arg4: memref<1x8x256xf32, #tpu.memory_space<vmem>>, %arg5: memref<8x324xf32, #tpu.memory_space<vmem>>) attributes {dimension_semantics = [#tpu.dimension_semantics<parallel>], iteration_bounds = array<i64: 2>, scalar_prefetch = 0 : i64, scratch_operands = 1 : i64, tpu.core_type = #tpu.core_type<tc>, window_params = [{transform_indices = @transform_0, window_bounds = array<i64: 1, 8, 256>}, {pipeline_mode = #tpu.pipeline_mode<synchronous>, transform_indices = @transform_1, window_bounds = array<i64: 8, 72>}, {pipeline_mode = #tpu.pipeline_mode<synchronous>, transform_indices = @transform_2, window_bounds = array<i64: 8, 1>}, {transform_indices = @transform_3, window_bounds = array<i64: 1, 8, 256>}]} {
    %cst = arith.constant 0.000000e+00 : f32
    %0 = vector.broadcast %cst : f32 to vector<8x324xf32>
    %c0 = arith.constant 0 : index
    %c0_0 = arith.constant 0 : index
    %1 = vector.load %arg5[%c0, %c0_0] : memref<8x324xf32, #tpu.memory_space<vmem>>, vector<8x324xf32>
    tpu.vector_store %arg5[%c0, %c0_0], %0 {strides = array<i32>} : memref<8x324xf32, #tpu.memory_space<vmem>>, vector<8x324xf32>,
    %c0_1 = arith.constant 0 : index
    %c0_2 = arith.constant 0 : index
    %c0_3 = arith.constant 0 : index
    %2 = vector.load %arg1[%c0_1, %c0_2, %c0_3] : memref<1x8x256xf32, #tpu.memory_space<vmem>>, vector<1x8x256xf32>
    %3 = vector.shape_cast %2 : vector<1x8x256xf32> to vector<8x256xf32>
    %4 = vector.extract_strided_slice %3 {offsets = [0, 0], sizes = [8, 16], strides = [1, 1]} : vector<8x256xf32> to vector<8x16xf32>
    %c0_4 = arith.constant 0 : index
    %c19 = arith.constant 19 : index
    %5 = vector.load %arg5[%c0_4, %c19] : memref<8x324xf32, #tpu.memory_space<vmem>>, vector<8x16xf32>
    tpu.vector_store %arg5[%c0_4, %c19], %4 {strides = array<i32>} : memref<8x324xf32, #tpu.memory_space<vmem>>, vector<8x16xf32>,
    %6 = vector.extract_strided_slice %3 {offsets = [0, 16], sizes = [8, 16], strides = [1, 1]} : vector<8x256xf32> to vector<8x16xf32>
    %c0_5 = arith.constant 0 : index
    %c37 = arith.constant 37 : index
    %7 = vector.load %arg5[%c0_5, %c37] : memref<8x324xf32, #tpu.memory_space<vmem>>, vector<8x16xf32>
    tpu.vector_store %arg5[%c0_5, %c37], %6 {strides = array<i32>} : memref<8x324xf32, #tpu.memory_space<vmem>>, vector<8x16xf32>,
    %8 = vector.extract_strided_slice %3 {offsets = [0, 32], sizes = [8, 16], strides = [1, 1]} : vector<8x256xf32> to vector<8x16xf32>
    %c0_6 = arith.constant 0 : index
    %c55 = arith.constant 55 : index
    %9 = vector.load %arg5[%c0_6, %c55] : memref<8x324xf32, #tpu.memory_space<vmem>>, vector<8x16xf32>
    tpu.vector_store %arg5[%c0_6, %c55], %8 {strides = array<i32>} : memref<8x324xf32, #tpu.memory_space<vmem>>, vector<8x16xf32>,
    %10 = vector.extract_strided_slice %3 {offsets = [0, 48], sizes = [8, 16], strides = [1, 1]} : vector<8x256xf32> to vector<8x16xf32>
    %c0_7 = arith.constant 0 : index
    %c73 = arith.constant 73 : index
    %11 = vector.load %arg5[%c0_7, %c73] : memref<8x324xf32, #tpu.memory_space<vmem>>, vector<8x16xf32>
    tpu.vector_store %arg5[%c0_7, %c73], %10 {strides = array<i32>} : memref<8x324xf32, #tpu.memory_space<vmem>>, vector<8x16xf32>,
    %12 = vector.extract_strided_slice %3 {offsets = [0, 64], sizes = [8, 16], strides = [1, 1]} : vector<8x256xf32> to vector<8x16xf32>
    %c0_8 = arith.constant 0 : index
    %c91 = arith.constant 91 : index
    %13 = vector.load %arg5[%c0_8, %c91] : memref<8x324xf32, #tpu.memory_space<vmem>>, vector<8x16xf32>
    tpu.vector_store %arg5[%c0_8, %c91], %12 {strides = array<i32>} : memref<8x324xf32, #tpu.memory_space<vmem>>, vector<8x16xf32>,
    %14 = vector.extract_strided_slice %3 {offsets = [0, 80], sizes = [8, 16], strides = [1, 1]} : vector<8x256xf32> to vector<8x16xf32>
    %c0_9 = arith.constant 0 : index
    %c109 = arith.constant 109 : index
    %15 = vector.load %arg5[%c0_9, %c109] : memref<8x324xf32, #tpu.memory_space<vmem>>, vector<8x16xf32>
    tpu.vector_store %arg5[%c0_9, %c109], %14 {strides = array<i32>} : memref<8x324xf32, #tpu.memory_space<vmem>>, vector<8x16xf32>,
    %16 = vector.extract_strided_slice %3 {offsets = [0, 96], sizes = [8, 16], strides = [1, 1]} : vector<8x256xf32> to vector<8x16xf32>
    %c0_10 = arith.constant 0 : index
    %c127 = arith.constant 127 : index
    %17 = vector.load %arg5[%c0_10, %c127] : memref<8x324xf32, #tpu.memory_space<vmem>>, vector<8x16xf32>
    tpu.vector_store %arg5[%c0_10, %c127], %16 {strides = array<i32>} : memref<8x324xf32, #tpu.memory_space<vmem>>, vector<8x16xf32>,
    %18 = vector.extract_strided_slice %3 {offsets = [0, 112], sizes = [8, 16], strides = [1, 1]} : vector<8x256xf32> to vector<8x16xf32>
    %c0_11 = arith.constant 0 : index
    %c145 = arith.constant 145 : index
    %19 = vector.load %arg5[%c0_11, %c145] : memref<8x324xf32, #tpu.memory_space<vmem>>, vector<8x16xf32>
    tpu.vector_store %arg5[%c0_11, %c145], %18 {strides = array<i32>} : memref<8x324xf32, #tpu.memory_space<vmem>>, vector<8x16xf32>,
    %20 = vector.extract_strided_slice %3 {offsets = [0, 128], sizes = [8, 16], strides = [1, 1]} : vector<8x256xf32> to vector<8x16xf32>
    %c0_12 = arith.constant 0 : index
    %c163 = arith.constant 163 : index
    %21 = vector.load %arg5[%c0_12, %c163] : memref<8x324xf32, #tpu.memory_space<vmem>>, vector<8x16xf32>
    tpu.vector_store %arg5[%c0_12, %c163], %20 {strides = array<i32>} : memref<8x324xf32, #tpu.memory_space<vmem>>, vector<8x16xf32>,
    %22 = vector.extract_strided_slice %3 {offsets = [0, 144], sizes = [8, 16], strides = [1, 1]} : vector<8x256xf32> to vector<8x16xf32>
    %c0_13 = arith.constant 0 : index
    %c181 = arith.constant 181 : index
    %23 = vector.load %arg5[%c0_13, %c181] : memref<8x324xf32, #tpu.memory_space<vmem>>, vector<8x16xf32>
    tpu.vector_store %arg5[%c0_13, %c181], %22 {strides = array<i32>} : memref<8x324xf32, #tpu.memory_space<vmem>>, vector<8x16xf32>,
    %24 = vector.extract_strided_slice %3 {offsets = [0, 160], sizes = [8, 16], strides = [1, 1]} : vector<8x256xf32> to vector<8x16xf32>
    %c0_14 = arith.constant 0 : index
    %c199 = arith.constant 199 : index
    %25 = vector.load %arg5[%c0_14, %c199] : memref<8x324xf32, #tpu.memory_space<vmem>>, vector<8x16xf32>
    tpu.vector_store %arg5[%c0_14, %c199], %24 {strides = array<i32>} : memref<8x324xf32, #tpu.memory_space<vmem>>, vector<8x16xf32>,
    %26 = vector.extract_strided_slice %3 {offsets = [0, 176], sizes = [8, 16], strides = [1, 1]} : vector<8x256xf32> to vector<8x16xf32>
    %c0_15 = arith.constant 0 : index
    %c217 = arith.constant 217 : index
    %27 = vector.load %arg5[%c0_15, %c217] : memref<8x324xf32, #tpu.memory_space<vmem>>, vector<8x16xf32>
    tpu.vector_store %arg5[%c0_15, %c217], %26 {strides = array<i32>} : memref<8x324xf32, #tpu.memory_space<vmem>>, vector<8x16xf32>,
    %28 = vector.extract_strided_slice %3 {offsets = [0, 192], sizes = [8, 16], strides = [1, 1]} : vector<8x256xf32> to vector<8x16xf32>
    %c0_16 = arith.constant 0 : index
    %c235 = arith.constant 235 : index
    %29 = vector.load %arg5[%c0_16, %c235] : memref<8x324xf32, #tpu.memory_space<vmem>>, vector<8x16xf32>
    tpu.vector_store %arg5[%c0_16, %c235], %28 {strides = array<i32>} : memref<8x324xf32, #tpu.memory_space<vmem>>, vector<8x16xf32>,
    %30 = vector.extract_strided_slice %3 {offsets = [0, 208], sizes = [8, 16], strides = [1, 1]} : vector<8x256xf32> to vector<8x16xf32>
    %c0_17 = arith.constant 0 : index
    %c253 = arith.constant 253 : index
    %31 = vector.load %arg5[%c0_17, %c253] : memref<8x324xf32, #tpu.memory_space<vmem>>, vector<8x16xf32>
    tpu.vector_store %arg5[%c0_17, %c253], %30 {strides = array<i32>} : memref<8x324xf32, #tpu.memory_space<vmem>>, vector<8x16xf32>,
    %32 = vector.extract_strided_slice %3 {offsets = [0, 224], sizes = [8, 16], strides = [1, 1]} : vector<8x256xf32> to vector<8x16xf32>
    %c0_18 = arith.constant 0 : index
    %c271 = arith.constant 271 : index
    %33 = vector.load %arg5[%c0_18, %c271] : memref<8x324xf32, #tpu.memory_space<vmem>>, vector<8x16xf32>
    tpu.vector_store %arg5[%c0_18, %c271], %32 {strides = array<i32>} : memref<8x324xf32, #tpu.memory_space<vmem>>, vector<8x16xf32>,
    %34 = vector.extract_strided_slice %3 {offsets = [0, 240], sizes = [8, 16], strides = [1, 1]} : vector<8x256xf32> to vector<8x16xf32>
    %c0_19 = arith.constant 0 : index
    %c289 = arith.constant 289 : index
    %35 = vector.load %arg5[%c0_19, %c289] : memref<8x324xf32, #tpu.memory_space<vmem>>, vector<8x16xf32>
    tpu.vector_store %arg5[%c0_19, %c289], %34 {strides = array<i32>} : memref<8x324xf32, #tpu.memory_space<vmem>>, vector<8x16xf32>,
    %c0_20 = arith.constant 0 : index
    %c0_21 = arith.constant 0 : index
    %36 = vector.load %arg5[%c0_20, %c0_21] : memref<8x324xf32, #tpu.memory_space<vmem>>, vector<8x324xf32>
    %37 = vector.extract_strided_slice %36 {offsets = [0, 0], sizes = [8, 286], strides = [1, 1]} : vector<8x324xf32> to vector<8x286xf32>
    %38 = vector.extract_strided_slice %36 {offsets = [0, 1], sizes = [8, 286], strides = [1, 1]} : vector<8x324xf32> to vector<8x286xf32>
    %39 = vector.extract_strided_slice %36 {offsets = [0, 2], sizes = [8, 286], strides = [1, 1]} : vector<8x324xf32> to vector<8x286xf32>
    %40 = vector.extract_strided_slice %36 {offsets = [0, 18], sizes = [8, 286], strides = [1, 1]} : vector<8x324xf32> to vector<8x286xf32>
    %41 = vector.extract_strided_slice %36 {offsets = [0, 19], sizes = [8, 286], strides = [1, 1]} : vector<8x324xf32> to vector<8x286xf32>
    %42 = vector.extract_strided_slice %36 {offsets = [0, 20], sizes = [8, 286], strides = [1, 1]} : vector<8x324xf32> to vector<8x286xf32>
    %43 = vector.extract_strided_slice %36 {offsets = [0, 36], sizes = [8, 286], strides = [1, 1]} : vector<8x324xf32> to vector<8x286xf32>
    %44 = vector.extract_strided_slice %36 {offsets = [0, 37], sizes = [8, 286], strides = [1, 1]} : vector<8x324xf32> to vector<8x286xf32>
    %45 = vector.extract_strided_slice %36 {offsets = [0, 38], sizes = [8, 286], strides = [1, 1]} : vector<8x324xf32> to vector<8x286xf32>
    %46 = tpu.concatenate %37, %38, %39, %40, %41, %42, %43, %44, %45 in 0 : vector<8x286xf32>, vector<8x286xf32>, vector<8x286xf32>, vector<8x286xf32>, vector<8x286xf32>, vector<8x286xf32>, vector<8x286xf32>, vector<8x286xf32>, vector<8x286xf32> -> vector<72x286xf32>
    %c0_22 = arith.constant 0 : index
    %c0_23 = arith.constant 0 : index
    %47 = vector.load %arg2[%c0_22, %c0_23] : memref<8x72xf32, #tpu.memory_space<vmem>>, vector<8x72xf32>
    %cst_24 = arith.constant dense<0.000000e+00> : vector<8x286xf32>
    %48 = tpu.matmul %47, %46, %cst_24 {dimension_numbers = #tpu.dot_dimension_numbers<[1], [0], [0], [1], [0, 0, 1, 1], [], []>} : vector<8x72xf32>, vector<72x286xf32>, vector<8x286xf32> -> vector<8x286xf32>
    %c0_25 = arith.constant 0 : index
    %c0_26 = arith.constant 0 : index
    %49 = vector.load %arg3[%c0_25, %c0_26] : memref<8x1xf32, #tpu.memory_space<vmem>>, vector<8x1xf32>
    %50 = vector.broadcast %49 : vector<8x1xf32> to vector<8x286xf32>
    %51 = arith.addf %48, %50 : vector<8x286xf32>
    %cst_27 = arith.constant 0.000000e+00 : f32
    %52 = vector.broadcast %cst_27 : f32 to vector<8x286xf32>
    %53 = arith.maximumf %51, %52 : vector<8x286xf32>
    %54 = vector.extract_strided_slice %53 {offsets = [0, 0], sizes = [8, 16], strides = [1, 1]} : vector<8x286xf32> to vector<8x16xf32>
    %c0_28 = arith.constant 0 : index
    %c0_29 = arith.constant 0 : index
    %c0_30 = arith.constant 0 : index
    %55 = vector.load %arg4[%c0_28, %c0_29, %c0_30] : memref<1x8x256xf32, #tpu.memory_space<vmem>>, vector<1x8x16xf32>
    %56 = vector.shape_cast %55 : vector<1x8x16xf32> to vector<8x16xf32>
    %57 = vector.shape_cast %54 : vector<8x16xf32> to vector<1x8x16xf32>
    tpu.vector_store %arg4[%c0_28, %c0_29, %c0_30], %57 {strides = array<i32>} : memref<1x8x256xf32, #tpu.memory_space<vmem>>, vector<1x8x16xf32>,
    %58 = vector.extract_strided_slice %53 {offsets = [0, 18], sizes = [8, 16], strides = [1, 1]} : vector<8x286xf32> to vector<8x16xf32>
    %c0_31 = arith.constant 0 : index
    %c0_32 = arith.constant 0 : index
    %c16 = arith.constant 16 : index
    %59 = vector.load %arg4[%c0_31, %c0_32, %c16] : memref<1x8x256xf32, #tpu.memory_space<vmem>>, vector<1x8x16xf32>
    %60 = vector.shape_cast %59 : vector<1x8x16xf32> to vector<8x16xf32>
    %61 = vector.shape_cast %58 : vector<8x16xf32> to vector<1x8x16xf32>
    tpu.vector_store %arg4[%c0_31, %c0_32, %c16], %61 {strides = array<i32>} : memref<1x8x256xf32, #tpu.memory_space<vmem>>, vector<1x8x16xf32>,
    %62 = vector.extract_strided_slice %53 {offsets = [0, 36], sizes = [8, 16], strides = [1, 1]} : vector<8x286xf32> to vector<8x16xf32>
    %c0_33 = arith.constant 0 : index
    %c0_34 = arith.constant 0 : index
    %c32 = arith.constant 32 : index
    %63 = vector.load %arg4[%c0_33, %c0_34, %c32] : memref<1x8x256xf32, #tpu.memory_space<vmem>>, vector<1x8x16xf32>
    %64 = vector.shape_cast %63 : vector<1x8x16xf32> to vector<8x16xf32>
    %65 = vector.shape_cast %62 : vector<8x16xf32> to vector<1x8x16xf32>
    tpu.vector_store %arg4[%c0_33, %c0_34, %c32], %65 {strides = array<i32>} : memref<1x8x256xf32, #tpu.memory_space<vmem>>, vector<1x8x16xf32>,
    %66 = vector.extract_strided_slice %53 {offsets = [0, 54], sizes = [8, 16], strides = [1, 1]} : vector<8x286xf32> to vector<8x16xf32>
    %c0_35 = arith.constant 0 : index
    %c0_36 = arith.constant 0 : index
    %c48 = arith.constant 48 : index
    %67 = vector.load %arg4[%c0_35, %c0_36, %c48] : memref<1x8x256xf32, #tpu.memory_space<vmem>>, vector<1x8x16xf32>
    %68 = vector.shape_cast %67 : vector<1x8x16xf32> to vector<8x16xf32>
    %69 = vector.shape_cast %66 : vector<8x16xf32> to vector<1x8x16xf32>
    tpu.vector_store %arg4[%c0_35, %c0_36, %c48], %69 {strides = array<i32>} : memref<1x8x256xf32, #tpu.memory_space<vmem>>, vector<1x8x16xf32>,
    %70 = vector.extract_strided_slice %53 {offsets = [0, 72], sizes = [8, 16], strides = [1, 1]} : vector<8x286xf32> to vector<8x16xf32>
    %c0_37 = arith.constant 0 : index
    %c0_38 = arith.constant 0 : index
    %c64 = arith.constant 64 : index
    %71 = vector.load %arg4[%c0_37, %c0_38, %c64] : memref<1x8x256xf32, #tpu.memory_space<vmem>>, vector<1x8x16xf32>
    %72 = vector.shape_cast %71 : vector<1x8x16xf32> to vector<8x16xf32>
    %73 = vector.shape_cast %70 : vector<8x16xf32> to vector<1x8x16xf32>
    tpu.vector_store %arg4[%c0_37, %c0_38, %c64], %73 {strides = array<i32>} : memref<1x8x256xf32, #tpu.memory_space<vmem>>, vector<1x8x16xf32>,
    %74 = vector.extract_strided_slice %53 {offsets = [0, 90], sizes = [8, 16], strides = [1, 1]} : vector<8x286xf32> to vector<8x16xf32>
    %c0_39 = arith.constant 0 : index
    %c0_40 = arith.constant 0 : index
    %c80 = arith.constant 80 : index
    %75 = vector.load %arg4[%c0_39, %c0_40, %c80] : memref<1x8x256xf32, #tpu.memory_space<vmem>>, vector<1x8x16xf32>
    %76 = vector.shape_cast %75 : vector<1x8x16xf32> to vector<8x16xf32>
    %77 = vector.shape_cast %74 : vector<8x16xf32> to vector<1x8x16xf32>
    tpu.vector_store %arg4[%c0_39, %c0_40, %c80], %77 {strides = array<i32>} : memref<1x8x256xf32, #tpu.memory_space<vmem>>, vector<1x8x16xf32>,
    %78 = vector.extract_strided_slice %53 {offsets = [0, 108], sizes = [8, 16], strides = [1, 1]} : vector<8x286xf32> to vector<8x16xf32>
    %c0_41 = arith.constant 0 : index
    %c0_42 = arith.constant 0 : index
    %c96 = arith.constant 96 : index
    %79 = vector.load %arg4[%c0_41, %c0_42, %c96] : memref<1x8x256xf32, #tpu.memory_space<vmem>>, vector<1x8x16xf32>
    %80 = vector.shape_cast %79 : vector<1x8x16xf32> to vector<8x16xf32>
    %81 = vector.shape_cast %78 : vector<8x16xf32> to vector<1x8x16xf32>
    tpu.vector_store %arg4[%c0_41, %c0_42, %c96], %81 {strides = array<i32>} : memref<1x8x256xf32, #tpu.memory_space<vmem>>, vector<1x8x16xf32>,
    %82 = vector.extract_strided_slice %53 {offsets = [0, 126], sizes = [8, 16], strides = [1, 1]} : vector<8x286xf32> to vector<8x16xf32>
    %c0_43 = arith.constant 0 : index
    %c0_44 = arith.constant 0 : index
    %c112 = arith.constant 112 : index
    %83 = vector.load %arg4[%c0_43, %c0_44, %c112] : memref<1x8x256xf32, #tpu.memory_space<vmem>>, vector<1x8x16xf32>
    %84 = vector.shape_cast %83 : vector<1x8x16xf32> to vector<8x16xf32>
    %85 = vector.shape_cast %82 : vector<8x16xf32> to vector<1x8x16xf32>
    tpu.vector_store %arg4[%c0_43, %c0_44, %c112], %85 {strides = array<i32>} : memref<1x8x256xf32, #tpu.memory_space<vmem>>, vector<1x8x16xf32>,
    %86 = vector.extract_strided_slice %53 {offsets = [0, 144], sizes = [8, 16], strides = [1, 1]} : vector<8x286xf32> to vector<8x16xf32>
    %c0_45 = arith.constant 0 : index
    %c0_46 = arith.constant 0 : index
    %c128 = arith.constant 128 : index
    %87 = vector.load %arg4[%c0_45, %c0_46, %c128] : memref<1x8x256xf32, #tpu.memory_space<vmem>>, vector<1x8x16xf32>
    %88 = vector.shape_cast %87 : vector<1x8x16xf32> to vector<8x16xf32>
    %89 = vector.shape_cast %86 : vector<8x16xf32> to vector<1x8x16xf32>
    tpu.vector_store %arg4[%c0_45, %c0_46, %c128], %89 {strides = array<i32>} : memref<1x8x256xf32, #tpu.memory_space<vmem>>, vector<1x8x16xf32>,
    %90 = vector.extract_strided_slice %53 {offsets = [0, 162], sizes = [8, 16], strides = [1, 1]} : vector<8x286xf32> to vector<8x16xf32>
    %c0_47 = arith.constant 0 : index
    %c0_48 = arith.constant 0 : index
    %c144 = arith.constant 144 : index
    %91 = vector.load %arg4[%c0_47, %c0_48, %c144] : memref<1x8x256xf32, #tpu.memory_space<vmem>>, vector<1x8x16xf32>
    %92 = vector.shape_cast %91 : vector<1x8x16xf32> to vector<8x16xf32>
    %93 = vector.shape_cast %90 : vector<8x16xf32> to vector<1x8x16xf32>
    tpu.vector_store %arg4[%c0_47, %c0_48, %c144], %93 {strides = array<i32>} : memref<1x8x256xf32, #tpu.memory_space<vmem>>, vector<1x8x16xf32>,
    %94 = vector.extract_strided_slice %53 {offsets = [0, 180], sizes = [8, 16], strides = [1, 1]} : vector<8x286xf32> to vector<8x16xf32>
    %c0_49 = arith.constant 0 : index
    %c0_50 = arith.constant 0 : index
    %c160 = arith.constant 160 : index
    %95 = vector.load %arg4[%c0_49, %c0_50, %c160] : memref<1x8x256xf32, #tpu.memory_space<vmem>>, vector<1x8x16xf32>
    %96 = vector.shape_cast %95 : vector<1x8x16xf32> to vector<8x16xf32>
    %97 = vector.shape_cast %94 : vector<8x16xf32> to vector<1x8x16xf32>
    tpu.vector_store %arg4[%c0_49, %c0_50, %c160], %97 {strides = array<i32>} : memref<1x8x256xf32, #tpu.memory_space<vmem>>, vector<1x8x16xf32>,
    %98 = vector.extract_strided_slice %53 {offsets = [0, 198], sizes = [8, 16], strides = [1, 1]} : vector<8x286xf32> to vector<8x16xf32>
    %c0_51 = arith.constant 0 : index
    %c0_52 = arith.constant 0 : index
    %c176 = arith.constant 176 : index
    %99 = vector.load %arg4[%c0_51, %c0_52, %c176] : memref<1x8x256xf32, #tpu.memory_space<vmem>>, vector<1x8x16xf32>
    %100 = vector.shape_cast %99 : vector<1x8x16xf32> to vector<8x16xf32>
    %101 = vector.shape_cast %98 : vector<8x16xf32> to vector<1x8x16xf32>
    tpu.vector_store %arg4[%c0_51, %c0_52, %c176], %101 {strides = array<i32>} : memref<1x8x256xf32, #tpu.memory_space<vmem>>, vector<1x8x16xf32>,
    %102 = vector.extract_strided_slice %53 {offsets = [0, 216], sizes = [8, 16], strides = [1, 1]} : vector<8x286xf32> to vector<8x16xf32>
    %c0_53 = arith.constant 0 : index
    %c0_54 = arith.constant 0 : index
    %c192 = arith.constant 192 : index
    %103 = vector.load %arg4[%c0_53, %c0_54, %c192] : memref<1x8x256xf32, #tpu.memory_space<vmem>>, vector<1x8x16xf32>
    %104 = vector.shape_cast %103 : vector<1x8x16xf32> to vector<8x16xf32>
    %105 = vector.shape_cast %102 : vector<8x16xf32> to vector<1x8x16xf32>
    tpu.vector_store %arg4[%c0_53, %c0_54, %c192], %105 {strides = array<i32>} : memref<1x8x256xf32, #tpu.memory_space<vmem>>, vector<1x8x16xf32>,
    %106 = vector.extract_strided_slice %53 {offsets = [0, 234], sizes = [8, 16], strides = [1, 1]} : vector<8x286xf32> to vector<8x16xf32>
    %c0_55 = arith.constant 0 : index
    %c0_56 = arith.constant 0 : index
    %c208 = arith.constant 208 : index
    %107 = vector.load %arg4[%c0_55, %c0_56, %c208] : memref<1x8x256xf32, #tpu.memory_space<vmem>>, vector<1x8x16xf32>
    %108 = vector.shape_cast %107 : vector<1x8x16xf32> to vector<8x16xf32>
    %109 = vector.shape_cast %106 : vector<8x16xf32> to vector<1x8x16xf32>
    tpu.vector_store %arg4[%c0_55, %c0_56, %c208], %109 {strides = array<i32>} : memref<1x8x256xf32, #tpu.memory_space<vmem>>, vector<1x8x16xf32>,
    %110 = vector.extract_strided_slice %53 {offsets = [0, 252], sizes = [8, 16], strides = [1, 1]} : vector<8x286xf32> to vector<8x16xf32>
    %c0_57 = arith.constant 0 : index
    %c0_58 = arith.constant 0 : index
    %c224 = arith.constant 224 : index
    %111 = vector.load %arg4[%c0_57, %c0_58, %c224] : memref<1x8x256xf32, #tpu.memory_space<vmem>>, vector<1x8x16xf32>
    %112 = vector.shape_cast %111 : vector<1x8x16xf32> to vector<8x16xf32>
    %113 = vector.shape_cast %110 : vector<8x16xf32> to vector<1x8x16xf32>
    tpu.vector_store %arg4[%c0_57, %c0_58, %c224], %113 {strides = array<i32>} : memref<1x8x256xf32, #tpu.memory_space<vmem>>, vector<1x8x16xf32>,
    %114 = vector.extract_strided_slice %53 {offsets = [0, 270], sizes = [8, 16], strides = [1, 1]} : vector<8x286xf32> to vector<8x16xf32>
    %c0_59 = arith.constant 0 : index
    %c0_60 = arith.constant 0 : index
    %c240 = arith.constant 240 : index
    %115 = vector.load %arg4[%c0_59, %c0_60, %c240] : memref<1x8x256xf32, #tpu.memory_space<vmem>>, vector<1x8x16xf32>
    %116 = vector.shape_cast %115 : vector<1x8x16xf32> to vector<8x16xf32>
    %117 = vector.shape_cast %114 : vector<8x16xf32> to vector<1x8x16xf32>
    tpu.vector_store %arg4[%c0_59, %c0_60, %c240], %117 {strides = array<i32>} : memref<1x8x256xf32, #tpu.memory_space<vmem>>, vector<1x8x16xf32>,
    return
  }
  func.func @transform_0(%arg0: i32) -> (i32, i32, i32) {
    %c0_i32 = arith.constant 0 : i32
    %c0_i32_0 = arith.constant 0 : i32
    %c0_i32_1 = arith.constant 0 : i32
    return %arg0, %c0_i32, %c0_i32_0 : i32, i32, i32
  }
  func.func @transform_1(%arg0: i32) -> (i32, i32) {
    %c0_i32 = arith.constant 0 : i32
    %c0_i32_0 = arith.constant 0 : i32
    %c0_i32_1 = arith.constant 0 : i32
    return %c0_i32, %c0_i32_0 : i32, i32
  }
  func.func @transform_2(%arg0: i32) -> (i32, i32) {
    %c0_i32 = arith.constant 0 : i32
    %c0_i32_0 = arith.constant 0 : i32
    %c0_i32_1 = arith.constant 0 : i32
    return %c0_i32, %c0_i32_0 : i32, i32
  }
  func.func @transform_3(%arg0: i32) -> (i32, i32, i32) {
    %c0_i32 = arith.constant 0 : i32
    %c0_i32_0 = arith.constant 0 : i32
    %c0_i32_1 = arith.constant 0 : i32
    return %arg0, %c0_i32, %c0_i32_0 : i32, i32, i32
  }
}

</mosaic_0001>

<bundles_post_ra>
// kernel: _conv3x3_relu_nchw.1
= control target key start
LH: loop header
LB: loop body
LE: loop exit
PB: predicated region body
PF: predicated region fallthrough
CT: control target
= control target key end

     0   :  { %s882_s12 = smov 0   ;;  %s975_s0 = inlined_call_operand.vmem [shape: f32[2,8,256], index: 0, kind: input, shape index: {}]   ;;  %s976_s1 = inlined_call_operand.vmem [shape: f32[8,72], index: 1, kind: input, shape index: {}]   ;;  %s977_s2 = inlined_call_operand.vmem [shape: f32[8,1], index: 2, kind: input, shape index: {}]   ;;  %s978_s3 = inlined_call_operand.vmem [shape: f32[2,8,256], index: 3, kind: output, shape index: {}]  }
   0x1 LB: > { %s655_s13 = sadd.s32 4294967295, %s820_s12   ;;  %p659_p0 = scmp.ge.s32.totalorder %s820_s12, 1  ;;  %s820_s12 = sphi %s882_s12, %s13_s12  }
   0x2   : > { %p137_p1 = scmp.lt.s32.totalorder %s820_s12, 3 }
   0x4   : > { %p138_p2 = pnand %p659_p0, %p137_p1 }
   0x5   : > { %p161_p3 = scmp.lt.s32.totalorder (!%p138_p2), %s655_s13, 1  ;;  %v822_v0 = vmov (!%p138_p2), 0.0   ;;  %s823_s18 = smov (!%p138_p2), 19   ;;  %vm173_vm0 = vcmask (!%p138_p2), 556032   ;;  %vm181_vm1 = vcmask (!%p138_p2), 285848   ;;  %vm213_vm2 = vcmask (!%p138_p2), 121856  }
   0x6   : > { %141 = sbr.rel (%p138_p2) target bundleno = 682 (0x2aa), region = 32  ;;  %171 = vst [vmem:[#allocation2] sm:$0xff] (!%p138_p2), %v822_v0  ;;  %172 = vst [vmem:[#allocation2 + $0x8] sm:$0xff] (!%p138_p2), %v822_v0  ;;  %440 = vmatprep.mubr.f32.mxu0 (!%p138_p2), %v822_v0  ;;  %s824_s19 = smov (!%p138_p2), 31   ;;  %vm218_vm3 = vcmask (!%p138_p2), 269448   ;;  %vm224_vm4 = vcmask (!%p138_p2), 417048  }
   0x7   : > { %s825_s20 = smov (!%p138_p2), 35   ;;  %s826_s21 = smov (!%p138_p2), 33   ;;  %174 = vst.msk [vmem:[#allocation2 + $0x10] sm:$0xff] (!%p138_p2), %vm173_vm0, %v822_v0  ;;  %vm229_vm5 = vcmask (!%p138_p2), 564648   ;;  %vm186_vm6 = vcmask (!%p138_p2), 433448   ;;  %vm234_vm7 = vcmask (!%p138_p2), 712248  }
   0x8   : > { %s827_s22 = smov (!%p138_p2), 37   ;;  %s828_s23 = smov (!%p138_p2), 21   ;;  %vm191_vm8 = vcmask (!%p138_p2), 581048   ;;  %vm239_vm9 = vcmask (!%p138_p2), 859848   ;;  %vm196_vm10 = vcmask (!%p138_p2), 728648   ;;  %vm201_vm11 = vcmask (!%p138_p2), 876248  }
   0x9   : > { %s829_s24 = smov (!%p138_p2), 39   ;;  %s830_s25 = smov (!%p138_p2), 23   ;;  %vm251_vm12 = vcmask (!%p138_p2), 105472   ;;  %vm256_vm13 = vcmask (!%p138_p2), 253048   ;;  %vm244_vm14 = vcmask (!%p138_p2), 1007448   ;;  %vm249_vm15 = vcmask (!%p138_p2), 1048552  }
   0xa   : > { %s831_s26 = smov (!%p138_p2), 41   ;;  %s832_s27 = smov (!%p138_p2), 25   ;;  %vm261_vm0 = vcmask (!%p138_p2), 400648   ;;  %v841_v20 = vmov (!%p138_p2), 0.0|0.0   ;;  %v848_v24 = vmov (!%p138_p2), 0   ;;  %v366_v25 = vld [vmem:[%s977_s2] sm:$0xff] (!%p138_p2) }
   0xb   : > { %s833_s28 = smov (!%p138_p2), 27   ;;  %s834_s29 = smov (!%p138_p2), 45   ;;  %717 = vmatprep.subr.bf16.mxu1 (!%p138_p2), %v841_v20  ;;  %812 = vset.pattern.permute.xlu1 (!%p138_p2), %v848_v24 }
   0xc   : > { %s835_s30 = smov (!%p138_p2), 47   ;;  %s836_s4 = smov (!%p138_p2), 43   ;;  %813 = vset.pattern.permute.xlu0 (!%p138_p2), %v848_v24 }
   0xd   : > { %s980_s13 = smov (!%p161_p3, %s655_s13), 1  ;;  %s837_s5 = smov 49  }
   0xe   : > { %s668_s14 = sshll.u32 %s980_s13, 4  ;;  %s838_s6 = smov 29  }
   0xf   : > { %s165_s17 = scalar_lea.vmem %s975_s0, %s668_s14  ;;  %s839_s7 = smov 126  }
  0x10   : > { %v175_v1 = vld [vmem:[%s165_s17] sm:$0xff]  ;;  %v176_v2 = vld [vmem:[%s165_s17 + $0x8] sm:$0xff]  ;;  %s840_s8 = smov 127   ;;  %s842_s9 = smov 109  }
  0x11   : > { %178 = vrot.lane.b32.xlu1 %v175_v1, %s823_s18  ;;  %208 = vrot.lane.b32.xlu0 %v175_v1, %s824_s19  ;;  %s843_s10 = smov 110   ;;  %s844_s11 = smov 92  }
  0x12   : > { %s845_s15 = smov 108   ;;  %s846_s16 = smov 91  }
  0x13   : > { %s849_s17 = smov 90   ;;  %s853_s13 = smov 112  }
  0x15   : > { %221 = vrot.lane.b32.xlu1 %v176_v2, %s825_s20  ;;  %215 = vrot.lane.b32.xlu0 %v175_v1, %s826_s21 }
  0x19   : > { %226 = vrot.lane.b32.xlu1 %v176_v2, %s827_s22  ;;  %183 = vrot.lane.b32.xlu0 %v175_v1, %s828_s23 }
  0x1d   : > { %231 = vrot.lane.b32.xlu1 %v176_v2, %s829_s24  ;;  %188 = vrot.lane.b32.xlu0 %v175_v1, %s830_s25  ;;  %s945_s24 = scalar_lea.vmem %s978_s3, %s668_s14  ;;  %s850_s25 = smov 100  }
  0x1e   : > { %s855_s14 = smov 120  }
  0x21   : > { %236 = vrot.lane.b32.xlu1 %v176_v2, %s831_s26  ;;  %193 = vrot.lane.b32.xlu0 %v175_v1, %s832_s27  ;;  %s851_s26 = smov 114   ;;  %s852_s27 = smov 124  }
  0x25   : > { %198 = vrot.lane.b32.xlu1 %v175_v1, %s833_s28  ;;  %246 = vrot.lane.b32.xlu0 %v176_v2, %s834_s29  ;;  %s854_s28 = smov 122   ;;  %s856_s29 = smov 118  }
  0x29   : > { %253 = vrot.lane.b32.xlu1 %v176_v2, %s835_s30  ;;  %241 = vrot.lane.b32.xlu0 %v176_v2, %s836_s4  ;;  %s857_s30 = smov 106   ;;  %s858_s4 = smov 116  }
  0x2d   : > { %258 = vrot.lane.b32.xlu1 %v176_v2, %s837_s5  ;;  %203 = vrot.lane.b32.xlu0 %v175_v1, %s838_s6  ;;  %s859_s5 = smov 104   ;;  %s860_s6 = smov 102  }
  0x83   : > { %v179_v3 = vpop.permute.xlu1 %178  ;;  %v209_v4 = vpop.permute.xlu0 %208 }
  0x84   : > { %182 = vst.msk [vmem:[#allocation2] sm:$0xff] %vm181_vm1, %v179_v3  ;;  %vm206_vm1 = vcmask 1023848  }
  0x85   : > { %214 = vst.msk [vmem:[#allocation2 + $0x8] sm:$0xff] %vm213_vm2, %v209_v4  ;;  %vm211_vm2 = vcmask 1048568  }
  0x87   : > { %v222_v5 = vpop.permute.xlu1 %221  ;;  %v216_v6 = vpop.permute.xlu0 %215 }
  0x88   : > { %219 = vst.msk [vmem:[#allocation2 + $0x8] sm:$0xff] %vm218_vm3, %v216_v6  ;;  %vm847_vm3 = vmmov 0  }
  0x89   : > { %225 = vst.msk [vmem:[#allocation2 + $0x8] sm:$0xff] %vm224_vm4, %v222_v5  ;;  %698 = vmatprep.mubr.msk.f32.mxu1 %vm847_vm3, %v822_v0  ;;  %vm275_vm4 = vcmask 1039360   ;;  %vm551_vm3 = vcmask 917248  }
  0x8b   : > { %v227_v7 = vpop.permute.xlu1 %226  ;;  %v184_v8 = vpop.permute.xlu0 %183 }
  0x8c   : > { %230 = vst.msk [vmem:[#allocation2 + $0x8] sm:$0xff] %vm229_vm5, %v227_v7  ;;  %vm299_vm5 = vcmask 900096  }
  0x8d   : > { %187 = vst.msk [vmem:[#allocation2] sm:$0xff] %vm186_vm6, %v184_v8  ;;  %vm287_vm6 = vcmask 1031168  }
  0x8f   : > { %v232_v9 = vpop.permute.xlu1 %231  ;;  %v189_v10 = vpop.permute.xlu0 %188 }
  0x90   : > { %235 = vst.msk [vmem:[#allocation2 + $0x8] sm:$0xff] %vm234_vm7, %v232_v9  ;;  %vm323_vm7 = vcmask 883712  }
  0x91   : > { %192 = vst.msk [vmem:[#allocation2] sm:$0xff] %vm191_vm8, %v189_v10  ;;  %vm311_vm8 = vcmask 891904  }
  0x93   : > { %v237_v11 = vpop.permute.xlu1 %236  ;;  %v194_v12 = vpop.permute.xlu0 %193 }
  0x94   : > { %240 = vst.msk [vmem:[#allocation2 + $0x8] sm:$0xff] %vm239_vm9, %v237_v11  ;;  %vm347_vm9 = vcmask 744448  }
  0x95   : > { %197 = vst.msk [vmem:[#allocation2] sm:$0xff] %vm196_vm10, %v194_v12  ;;  %vm335_vm10 = vcmask 752640  }
  0x97   : > { %v199_v13 = vpop.permute.xlu1 %198  ;;  %v247_v14 = vpop.permute.xlu0 %246 }
  0x98   : > { %202 = vst.msk [vmem:[#allocation2] sm:$0xff] %vm201_vm11, %v199_v13  ;;  %vm359_vm11 = vcmask 736256  }
  0x99   : > { %252 = vst.msk [vmem:[#allocation2 + $0x10] sm:$0xff] %vm251_vm12, %v247_v14  ;;  %vm372_vm12 = vcmask 588800  }
  0x9b   : > { %v254_v15 = vpop.permute.xlu1 %253  ;;  %v242_v16 = vpop.permute.xlu0 %241 }
  0x9c   : > { %257 = vst.msk [vmem:[#allocation2 + $0x10] sm:$0xff] %vm256_vm13, %v254_v15  ;;  %vm520_vm13 = vcmask 130048  }
  0x9d   : > { %245 = vst.msk [vmem:[#allocation2 + $0x8] sm:$0xff] %vm244_vm14, %v242_v16  ;;  %vm526_vm14 = vcmask 261248  }
  0x9e   : > { %250 = vst.msk [vmem:[#allocation2 + $0x8] sm:$0xff] %vm249_vm15, %v247_v14  ;;  %vm531_vm15 = vcmask 392448  }
  0x9f   : > { %v259_v17 = vpop.permute.xlu1 %258  ;;  %v204_v18 = vpop.permute.xlu0 %203 }
  0xa0   : > { %262 = vst.msk [vmem:[#allocation2 + $0x10] sm:$0xff] %vm261_vm0, %v259_v17  ;;  %vm536_vm0 = vcmask 523648  }
  0xa1   : > { %207 = vst.msk [vmem:[#allocation2] sm:$0xff] %vm206_vm1, %v204_v18  ;;  %vm541_vm1 = vcmask 654848  }
  0xa2   : > { %212 = vst.msk [vmem:[#allocation2] sm:$0xff] %vm211_vm2, %v209_v4  ;;  %vm546_vm2 = vcmask 786048  }
  0xa5   : > { %v264_v22 = vld [vmem:[#allocation2 + $0x8] sm:$0xff] }
  0xa7   : > { %v265_v21 = vld [vmem:[#allocation2 + $0x10] sm:$0xff] }
  0xa8   : > { %v777_v23 = vpack.i.bf16 %v265_v21, %v264_v22 }
  0xa9   : > { %v902_v19 = vld [vmem:[#allocation2] sm:$0xff] }
  0xaa   : > { %281 = vrot.lane.b32.xlu0 %v902_v19, %s839_s7  ;;  %269 = vrot.lane.b32.xlu1 %v902_v19, %s840_s8 }
  0xae   : > { %305 = vrot.lane.b32.xlu0 %v902_v19, %s842_s9  ;;  %293 = vrot.lane.b32.xlu1 %v902_v19, %s843_s10 }
  0xb2   : > { %329 = vrot.lane.b32.xlu0 %v902_v19, %s844_s11  ;;  %317 = vrot.lane.b32.xlu1 %v902_v19, %s845_s15 }
  0xb6   : > { %778 = vrot.lane.b32.xlu0 %v777_v23, %s840_s8  ;;  %788 = vrot.lane.b32.xlu1 %v777_v23, %s843_s10 }
  0xba   : > { %783 = vrot.lane.b32.xlu0 %v777_v23, %s839_s7  ;;  %798 = vrot.lane.b32.xlu1 %v777_v23, %s845_s15 }
  0xbe   : > { %793 = vrot.lane.b32.xlu0 %v777_v23, %s842_s9  ;;  %808 = vrot.lane.b32.xlu1 %v777_v23, %s846_s16 }
  0xc2   : > { %803 = vrot.lane.b32.xlu0 %v777_v23, %s844_s11  ;;  %341 = vrot.lane.b32.xlu1 %v902_v19, %s846_s16 }
  0xc6   : > { %355 = vrot.lane.b32.xlu0 %v264_v22, %s849_s17  ;;  %357 = vrot.lane.b32.xlu1 %v265_v21, %s849_s17 }
  0xca   : > { %353 = vrot.lane.b32.xlu0 %v902_v19, %s849_s17  ;;  %369 = vperm.xlu1 %812, %v366_v25  }
 0x11c   : > { %v282_v26 = vpop.permute.xlu0 %281  ;;  %v270_v27 = vpop.permute.xlu1 %269 }
 0x120   : > { %v306_v28 = vpop.permute.xlu0 %305  ;;  %v294_v29 = vpop.permute.xlu1 %293 }
 0x124   : > { %v923_v30 = vpop.permute.xlu0 %329  ;;  %v318_v31 = vpop.permute.xlu1 %317 }
 0x128   : > { %v779_v32 = vpop.permute.xlu0 %778  ;;  %v789_v33 = vpop.permute.xlu1 %788 }
 0x129   : > { %v781_v34 = vunpack.i.h.bf16 %v779_v32  ;;  %v780_v35 = vunpack.i.l.bf16 %v779_v32  ;;  %v791_v36 = vunpack.i.h.bf16 %v789_v33  ;;  %v790_v37 = vunpack.i.l.bf16 %v789_v33 }
 0x12b   : > { %v718_v38 = vpack.c.bf16 %v781_v34, %v265_v21  ;;  %v277_v39 = vsel %vm275_vm4, %v780_v35, %v781_v34  ;;  %v276_v40 = vsel %vm275_vm4, %v270_v27, %v780_v35  ;;  %v301_v49 = vsel %vm299_vm5, %v790_v37, %v791_v36 }
 0x12c   : > { %v784_v41 = vpop.permute.xlu0 %783  ;;  %v799_v42 = vpop.permute.xlu1 %798  ;;  %v701_v43 = vpack.c.bf16 %v277_v39, %v264_v22  ;;  %v703_v44 = vpack.c.bf16 %v276_v40, %v902_v19  ;;  %v300_v53 = vsel %vm299_vm5, %v294_v29, %v790_v37  ;;  %vm592_vm4 = vcmask 818176  }
 0x12d   : > { %v786_v45 = vunpack.i.h.bf16 %v784_v41  ;;  %v785_v46 = vunpack.i.l.bf16 %v784_v41  ;;  %719 = vmatpush3.bf16.msra.mxu1 %v718_v38  ;;  %v801_v47 = vunpack.i.h.bf16 %v799_v42  ;;  %v800_v48 = vunpack.i.l.bf16 %v799_v42 }
 0x12e   : > { %702 = vmatprep.subr.bf16.mxu0 %v701_v43  ;;  %720 = vmatprep.subr.bf16.mxu1 %v841_v20  ;;  %vm558_vm5 = vcmask 932864  }
 0x12f   : > { %v721_v50 = vpack.c.bf16 %v791_v36, %v786_v45  ;;  %704 = vmatpush1.bf16.msra.mxu0 %v703_v44  ;;  %v289_v51 = vsel %vm287_vm6, %v785_v46, %v786_v45  ;;  %v288_v52 = vsel %vm287_vm6, %v282_v26, %v785_v46  ;;  %v325_v62 = vsel %vm323_vm7, %v800_v48, %v801_v47 }
 0x130   : > { %v794_v54 = vpop.permute.xlu0 %793  ;;  %v809_v55 = vpop.permute.xlu1 %808  ;;  %v705_v56 = vpack.c.bf16 %v301_v49, %v289_v51  ;;  %v707_v57 = vpack.c.bf16 %v300_v53, %v288_v52  ;;  %v324_v3 = vsel %vm323_vm7, %v318_v31, %v800_v48  ;;  %vm561_vm6 = vcmask 1048448  }
 0x131   : > { %v796_v58 = vunpack.i.h.bf16 %v794_v54  ;;  %v795_v59 = vunpack.i.l.bf16 %v794_v54  ;;  %722 = vmatpush3.bf16.msra.mxu1 %v721_v50  ;;  %v811_v60 = vunpack.i.h.bf16 %v809_v55  ;;  %v810_v61 = vunpack.i.l.bf16 %v809_v55 }
 0x132   : > { %706 = vmatprep.subr.bf16.mxu0 %v705_v56  ;;  %723 = vmatprep.subr.bf16.mxu1 %v841_v20 }
 0x133   : > { %v724_v63 = vpack.c.bf16 %v801_v47, %v796_v58  ;;  %708 = vmatpush1.bf16.msra.mxu0 %v707_v57  ;;  %v313_v1 = vsel %vm311_vm8, %v795_v59, %v796_v58  ;;  %v312_v2 = vsel %vm311_vm8, %v306_v28, %v795_v59  ;;  %v349_v10 = vsel %vm347_vm9, %v810_v61, %v811_v60 }
 0x134   : > { %v804_v4 = vpop.permute.xlu0 %803  ;;  %v342_v5 = vpop.permute.xlu1 %341  ;;  %v709_v6 = vpack.c.bf16 %v325_v62, %v313_v1  ;;  %v711_v7 = vpack.c.bf16 %v324_v3, %v312_v2 }
 0x135   : > { %v806_v8 = vunpack.i.h.bf16 %v804_v4  ;;  %v805_v9 = vunpack.i.l.bf16 %v804_v4  ;;  %725 = vmatpush3.bf16.msra.mxu1 %v724_v63  ;;  %v348_v13 = vsel %vm347_vm9, %v342_v5, %v810_v61 }
 0x136   : > { %710 = vmatprep.subr.bf16.mxu0 %v709_v6  ;;  %726 = vmatprep.subr.bf16.mxu1 %v841_v20  ;;  %v365_v20 = vld [vmem:[%s976_s1] sm:$0xff] }
 0x137   : > { %v727_v11 = vpack.c.bf16 %v811_v60, %v806_v8  ;;  %v336_v12 = vsel %vm335_vm10, %v923_v30, %v805_v9  ;;  %712 = vmatpush1.bf16.msra.mxu0 %v711_v7  ;;  %v337_v14 = vsel %vm335_vm10, %v805_v9, %v806_v8 }
 0x138   : > { %v715_v15 = vpack.c.bf16 %v348_v13, %v336_v12  ;;  %v356_v16 = vpop.permute.xlu0 %355  ;;  %v358_v17 = vpop.permute.xlu1 %357  ;;  %v713_v18 = vpack.c.bf16 %v349_v10, %v337_v14 }
 0x139   : > { %728 = vmatpush3.bf16.msra.mxu1 %v727_v11  ;;  %v361_v19 = vsel %vm359_vm11, %v356_v16, %v358_v17 }
 0x13a   : > { %714 = vmatprep.subr.bf16.mxu0 %v713_v18  ;;  %696 = vmatprep.subr.mxu1 %v822_v0 }
 0x13b   : > { %716 = vmatpush1.bf16.msra.mxu0 %v715_v15 }
 0x13c   : > { %v354_v21 = vpop.permute.xlu0 %353  ;;  %392 = vmatprep.subr.mxu0 %v361_v19 }
 0x13d   : > { %697 = vmatpush3.msra.mxu1 %v358_v17  ;;  %v360_v22 = vsel %vm359_vm11, %v354_v21, %v356_v16 }
 0x13e   : > { %699 = vmatmul.mubr.msk.f32.vlgmr.msra.gmra.mrb[0].mxu1 %vm372_vm12, %v365_v20 }
 0x13f   : > { %393 = vmatpush1.msra.mxu0 %v360_v22 }
 0x140   : > { %664 = vmatmul.mubr.msk.f32.vlgmr.msra.gmra.mrb[0].mxu0 %vm372_vm12, %v365_v20 }
 0x149   : > { %v370_v23 = vpop.permute.xlu1 %369 }
 0x211   : > { %v513_v24 = vpop.f32.mrb[0].mxu1 }
 0x212   : > { %v514_v25 = vadd.f32 %v513_v24, %v370_v23  ;;  %v700_v26 = vpop.f32.mrb[1].mxu1 }
 0x213   : > { %v442_v0 = vpop.f32.mrb[0].mxu0 }
 0x214   : > { %v519_v27 = vmax.f32 %v514_v25, 0.0  ;;  %v443_v28 = vadd.f32 %v442_v0, %v370_v23  ;;  %v444_v29 = vpop.f32.mrb[1].mxu0 }
 0x215   : > { %v445_v31 = vadd.f32 %v444_v29, %v370_v23 }
 0x216   : > { %v517_v30 = vmax.f32 %v443_v28, 0.0  ;;  %590 = vrot.lane.b32.xlu0 %v519_v27, %s850_s25 }
 0x217   : > { %v518_v32 = vmax.f32 %v445_v31, 0.0 }
 0x218   : > { %523 = vrot.lane.b32.xlu1 %v517_v30, %s839_s7  ;;  %521 = vst.msk [vmem:[%s945_s24] sm:$0xff] %vm520_vm13, %v517_v30  ;;  %s861_s7 = smov 98  }
 0x21a   : > { %554 = vrot.lane.b32.xlu0 %v517_v30, %s851_s26 }
 0x21c   : > { %528 = vrot.lane.b32.xlu1 %v517_v30, %s852_s27 }
 0x21e   : > { %563 = vrot.lane.b32.xlu0 %v518_v32, %s853_s13 }
 0x220   : > { %533 = vrot.lane.b32.xlu1 %v517_v30, %s854_s28 }
 0x222   : > { %567 = vrot.lane.b32.xlu0 %v518_v32, %s843_s10 }
 0x224   : > { %538 = vrot.lane.b32.xlu1 %v517_v30, %s855_s14 }
 0x226   : > { %571 = vrot.lane.b32.xlu0 %v518_v32, %s845_s15 }
 0x228   : > { %543 = vrot.lane.b32.xlu1 %v517_v30, %s856_s29 }
 0x22a   : > { %575 = vrot.lane.b32.xlu0 %v518_v32, %s857_s30 }
 0x22c   : > { %548 = vrot.lane.b32.xlu1 %v517_v30, %s858_s4 }
 0x22e   : > { %579 = vrot.lane.b32.xlu0 %v518_v32, %s859_s5 }
 0x230   : > { %588 = vrot.lane.b32.xlu1 %v518_v32, %s850_s25 }
 0x232   : > { %583 = vrot.lane.b32.xlu0 %v518_v32, %s860_s6 }
 0x234   : > { %556 = vrot.lane.b32.xlu1 %v518_v32, %s851_s26 }
 0x236   : > { %596 = vrot.lane.b32.xlu0 %v519_v27, %s861_s7 }
 0x288   : > { %v591_v33 = vpop.permute.xlu0 %590 }
 0x28a   : > { %v524_v34 = vpop.permute.xlu1 %523 }
 0x28b   : > { %527 = vst.msk [vmem:[%s945_s24] sm:$0xff] %vm526_vm14, %v524_v34 }
 0x28c   : > { %v555_v35 = vpop.permute.xlu0 %554 }
 0x28e   : > { %v529_v36 = vpop.permute.xlu1 %528 }
 0x28f   : > { %532 = vst.msk [vmem:[%s945_s24] sm:$0xff] %vm531_vm15, %v529_v36 }
 0x290   : > { %v564_v37 = vpop.permute.xlu0 %563 }
 0x291   : > { %566 = vst.msk [vmem:[%s945_s24 + $0x8] sm:$0xff] %vm520_vm13, %v564_v37 }
 0x292   : > { %v534_v38 = vpop.permute.xlu1 %533 }
 0x293   : > { %537 = vst.msk [vmem:[%s945_s24] sm:$0xff] %vm536_vm0, %v534_v38 }
 0x294   : > { %v568_v39 = vpop.permute.xlu0 %567 }
 0x295   : > { %570 = vst.msk [vmem:[%s945_s24 + $0x8] sm:$0xff] %vm526_vm14, %v568_v39 }
 0x296   : > { %v539_v40 = vpop.permute.xlu1 %538 }
 0x297   : > { %542 = vst.msk [vmem:[%s945_s24] sm:$0xff] %vm541_vm1, %v539_v40 }
 0x298   : > { %v572_v41 = vpop.permute.xlu0 %571 }
 0x299   : > { %574 = vst.msk [vmem:[%s945_s24 + $0x8] sm:$0xff] %vm531_vm15, %v572_v41 }
 0x29a   : > { %v544_v42 = vpop.permute.xlu1 %543 }
 0x29b   : > { %547 = vst.msk [vmem:[%s945_s24] sm:$0xff] %vm546_vm2, %v544_v42 }
 0x29c   : > { %v576_v43 = vpop.permute.xlu0 %575 }
 0x29d   : > { %578 = vst.msk [vmem:[%s945_s24 + $0x8] sm:$0xff] %vm536_vm0, %v576_v43 }
 0x29e   : > { %v549_v44 = vpop.permute.xlu1 %548 }
 0x29f   : > { %552 = vst.msk [vmem:[%s945_s24] sm:$0xff] %vm551_vm3, %v549_v44 }
 0x2a0   : > { %v580_v45 = vpop.permute.xlu0 %579 }
 0x2a1   : > { %582 = vst.msk [vmem:[%s945_s24 + $0x8] sm:$0xff] %vm541_vm1, %v580_v45 }
 0x2a2   : > { %v589_v46 = vpop.permute.xlu1 %588 }
 0x2a3   : > { %v593_v48 = vsel %vm592_vm4, %v589_v46, %v591_v33 }
 0x2a4   : > { %v584_v47 = vpop.permute.xlu0 %583 }
 0x2a5   : > { %586 = vst.msk [vmem:[%s945_s24 + $0x8] sm:$0xff] %vm546_vm2, %v584_v47 }
 0x2a6   : > { %595 = vst.msk [vmem:[%s945_s24 + $0x8] sm:$0xff] %vm551_vm3, %v593_v48  ;;  %v557_v49 = vpop.permute.xlu1 %556 }
 0x2a7   : > { %v559_v50 = vsel %vm558_vm5, %v555_v35, %v557_v49 }
 0x2a8   : > { %562 = vst.msk [vmem:[%s945_s24] sm:$0xff] %vm561_vm6, %v559_v50  ;;  %v597_v51 = vpop.permute.xlu0 %596 }
 0x2a9   : > { %599 = vst.msk [vmem:[%s945_s24 + $0x8] sm:$0xff] %vm561_vm6, %v597_v51 }
 0x2aa PF: > { %s13_s12 = sadd.s32 1, %s820_s12  }
 0x2ab   : > { %p10_p4 = scmp.ge.s32.totalorder %s13_s12, 4  }
 0x2ad   :  { %12 = sbr.rel (!%p10_p4) target bundleno = 1 (0x1), region = 62 }

</bundles_post_ra>
